<compile_context>
chip_gen: v6e
topology: v6e:2x2x1
jax: 0.10.0
libtpu: 0.0.40
codegen_flags: <defaults>
</compile_context>

<pallas_src>
import math
from functools import partial

import jax
import jax.numpy as jnp
from jax import lax
from jax.experimental import pallas as pl
from jax.experimental.pallas import tpu as pltpu

_EPS = 1e-12          # F.normalize default eps (clamp_min on the norm)
_LANE = 128


# ---------------------------------------------------------------------------
# In-kernel helpers
# ---------------------------------------------------------------------------
def _inv_row_norms_lanes(w):
    """(1, O) float32 = 1 / max(||w_row||_2, eps), laid out lane-major.

    Squares are taken in f32 and reduced over D with a ones-matmul on the MXU so
    the result is produced directly in the (1, O) layout needed by the column
    post-scale (no cross-layout transpose, no materialized normalized W copy).
    """
    wf = w.astype(jnp.float32)
    w_sq = wf * wf                                             # (O, D) f32
    ones = jnp.ones((8, w_sq.shape[1]), dtype=jnp.float32)
    w_ss = lax.dot_general(
        ones, w_sq,
        dimension_numbers=(((1,), (1,)), ((), ())),
        preferred_element_type=jnp.float32,
    )[0:1, :]                                                  # (1, O)
    return 1.0 / jnp.maximum(jnp.sqrt(w_ss), jnp.float32(_EPS))


def _cosine_tile(x, w, inv_x, inv_w, out_dtype):
    """(TM, TN) tile of normalize(x) @ normalize(w).T as a post-scaled matmul."""
    # TODO(synk): expose precision=lax.Precision.HIGHEST for bit-tight f32 parity
    # (default TPU matmul precision rounds operands to bf16, ~1e-3 deviation).
    s = lax.dot_general(
        x, w,
        dimension_numbers=(((1,), (1,)), ((), ())),
        preferred_element_type=jnp.float32,
    )                                                          # (TM, TN) f32
    return (s * inv_x * inv_w).astype(out_dtype)


# ---------------------------------------------------------------------------
# Kernels
# ---------------------------------------------------------------------------
def _fused_kernel(x_ref, inv_x_ref, w1_ref, w2_ref, old_ref, new_ref,
                  inv_w1_ref, inv_w2_ref):
    """Both heads in one call. grid=(B_tiles,); W1/W2 whole & VMEM-resident."""
    @pl.when(pl.program_id(0) == 0)
    def _():
        # Weight norms computed once per call, cached in scratch.
        inv_w1_ref[...] = _inv_row_norms_lanes(w1_ref[...])
        inv_w2_ref[...] = _inv_row_norms_lanes(w2_ref[...])

    x = x_ref[...]
    inv_x = inv_x_ref[...]
    old_ref[...] = _cosine_tile(x, w1_ref[...], inv_x, inv_w1_ref[...],
                                old_ref.dtype)
    new_ref[...] = _cosine_tile(x, w2_ref[...], inv_x, inv_w2_ref[...],
                                new_ref.dtype)


def _tiled_kernel(x_ref, inv_x_ref, w_ref, cos_ref, inv_w_ref):
    """One head, tiled. grid=(O_tiles, B_tiles): weights outer, batch inner."""
    @pl.when(pl.program_id(1) == 0)
    def _():
        # New weight tile just arrived (inner batch loop restarted): refresh the
        # cached (1, TN) inverse row norms; reused for every batch tile.
        inv_w_ref[...] = _inv_row_norms_lanes(w_ref[...])

    cos_ref[...] = _cosine_tile(x_ref[...], w_ref[...], inv_x_ref[...],
                                inv_w_ref[...], cos_ref.dtype)


# ---------------------------------------------------------------------------
# Wrapper-side helpers
# ---------------------------------------------------------------------------
def _vmem_budget_bytes():
    """Scoped-VMEM request keyed off the chip generation (safe fallback)."""
    phys = 64 * 1024 * 1024
    try:
        phys = int(pltpu.get_tpu_info().vmem_capacity_bytes)
    except Exception:
        pass
    if phys <= 64 * 1024 * 1024:
        return 52 * 1024 * 1024        # v7x-class: leave compiler headroom
    return 96 * 1024 * 1024            # v5e/v6e: 128 MiB physical VMEM


def _pad_rows(w):
    """Pad out_features up to a multiple of 128 (zero rows -> zero scores)."""
    o = w.shape[0]
    o_pad = max(_LANE, ((o + _LANE - 1) // _LANE) * _LANE)
    if o_pad == o:
        return w, o
    return jnp.pad(w, ((0, o_pad - o), (0, 0))), o


def _fused_fits(tm, d, o1p, o2p, x_itemsize, w_itemsize, budget):
    o_tot = o1p + o2p
    need = (2 * (tm * d * x_itemsize + tm * 4)   # x + inv_x tiles (double-buffered)
            + 2 * o_tot * d * w_itemsize         # resident weights (2 bufs alloc'd)
            + 2 * tm * o_tot * 4                 # both outputs (double-buffered)
            + o_tot * 4)                         # inv_w scratch
    return need <= 0.6 * budget


def _pick_tiles_tiled(b, o_pad, d, x_itemsize, w_itemsize, budget):
    big = budget > 64 * 1024 * 1024              # v5e/v6e: allow 512-wide tiles
    cap = 512 if big else 256
    tn = min(o_pad, cap)
    # Ensure >= 2 tiles along the parallel O axis when O allows it, so both
    # v7x TensorCores get work.
    if o_pad >= 2 * _LANE and pl.cdiv(o_pad, tn) < 2:
        tn = max(_LANE, ((o_pad // 2) // _LANE) * _LANE)
    tm = b if b <= cap else cap

    def vmem_need(tm_, tn_):
        return (2 * (tm_ * d * x_itemsize + tm_ * 4)   # x + inv_x, double-buffered
                + 2 * tn_ * d * w_itemsize             # weight tile buffers
                + 2 * tm_ * tn_ * 4                    # output tile, double-buffered
                + tn_ * 4)                             # inv_w scratch

    while vmem_need(tm, tn) > 0.7 * budget and tn > _LANE:
        tn = max(_LANE, tn // 2)
    while vmem_need(tm, tn) > 0.7 * budget and tm >= 16 and tm % 8 == 0:
        tm //= 2
    return tm, tn


# ---------------------------------------------------------------------------
# pallas_call wrappers
# ---------------------------------------------------------------------------
def _fused_scores(x, inv_x, w1p, w2p, budget, tm):
    b, d = x.shape
    o1p = w1p.shape[0]
    o2p = w2p.shape[0]
    xb = jnp.dtype(x.dtype).itemsize
    wb = jnp.dtype(w1p.dtype).itemsize
    cost = pl.CostEstimate(
        flops=2 * b * (o1p + o2p) * d + 2 * 8 * (o1p + o2p) * d,
        transcendentals=0,
        bytes_accessed=(o1p + o2p) * d * wb + b * d * xb + b * 4
                       + b * (o1p + o2p) * 4,
    )
    return pl.pallas_call(
        _fused_kernel,
        out_shape=(jax.ShapeDtypeStruct((b, o1p), jnp.float32),
                   jax.ShapeDtypeStruct((b, o2p), jnp.float32)),
        grid=(pl.cdiv(b, tm),),
        in_specs=[
            pl.BlockSpec((tm, d), lambda i: (i, 0)),     # x tile
            pl.BlockSpec((tm, 1), lambda i: (i, 0)),     # precomputed 1/||x||
            pl.BlockSpec((o1p, d), lambda i: (0, 0)),    # whole W1: HBM-read once
            pl.BlockSpec((o2p, d), lambda i: (0, 0)),    # whole W2: HBM-read once
        ],
        out_specs=[
            pl.BlockSpec((tm, o1p), lambda i: (i, 0)),
            pl.BlockSpec((tm, o2p), lambda i: (i, 0)),
        ],
        scratch_shapes=[pltpu.VMEM((1, o1p), jnp.float32),
                        pltpu.VMEM((1, o2p), jnp.float32)],
        compiler_params=pltpu.CompilerParams(
            # Batch runs sequentially on one core so the pl.when(b == 0)
            # scratch-cached weight norms are valid for every batch tile.
            dimension_semantics=("arbitrary",),
            vmem_limit_bytes=int(budget),
        ),
        cost_estimate=cost,
    )(x, inv_x, w1p, w2p)


def _tiled_scores(x, inv_x, w_pad, budget):
    b, d = x.shape
    o_pad = w_pad.shape[0]
    xb = jnp.dtype(x.dtype).itemsize
    wb = jnp.dtype(w_pad.dtype).itemsize
    tm, tn = _pick_tiles_tiled(b, o_pad, d, xb, wb, budget)
    n_o = pl.cdiv(o_pad, tn)
    n_b = pl.cdiv(b, tm)
    cost = pl.CostEstimate(
        flops=2 * b * o_pad * d + 2 * 8 * o_pad * d,
        transcendentals=0,
        bytes_accessed=o_pad * d * wb + n_o * (b * d * xb + b * 4) + b * o_pad * 4,
    )
    # NOTE: pipeline_mode=pl.Buffered(3) on the x spec is a cheap extra sweep if
    # the inner-axis DMA ever shows up exposed; default double-buffering is used.
    return pl.pallas_call(
        _tiled_kernel,
        out_shape=jax.ShapeDtypeStruct((b, o_pad), jnp.float32),
        grid=(n_o, n_b),                                  # weights OUTER, batch inner
        in_specs=[
            pl.BlockSpec((tm, d), lambda o, i: (i, 0)),   # x: small, re-streamed per O tile
            pl.BlockSpec((tm, 1), lambda o, i: (i, 0)),   # precomputed 1/||x||
            pl.BlockSpec((tn, d), lambda o, i: (o, 0)),   # W tile: HBM-read exactly once
        ],
        out_specs=pl.BlockSpec((tm, tn), lambda o, i: (i, o)),
        scratch_shapes=[pltpu.VMEM((1, tn), jnp.float32)],
        compiler_params=pltpu.CompilerParams(
            dimension_semantics=("parallel", "arbitrary"),
            vmem_limit_bytes=int(budget),
        ),
        cost_estimate=cost,
    )(x, inv_x, w_pad)


# ---------------------------------------------------------------------------
# SplitCosineLinear forward
# ---------------------------------------------------------------------------
@partial(jax.jit, static_argnames=("force_tiled",))
def split_cosine_linear(x, weight1, weight2, sigma, *, force_tiled=False):
    """Forward of SplitCosineLinear.

    x: (B, D); weight1: (O1, D); weight2: (O2, D); sigma: (1,).
    Scores/logits are returned in float32 (MXU accumulator precision).
    """
    b, d = x.shape
    if weight1.shape[1] != d or weight2.shape[1] != d:
        raise ValueError("in_features mismatch")

    # 1/||x_row|| once, in f32 (x is tiny relative to W; frees in-kernel VPU/XLU).
    xf = x.astype(jnp.float32)
    inv_x = 1.0 / jnp.maximum(
        jnp.sqrt(jnp.sum(xf * xf, axis=1, keepdims=True)), jnp.float32(_EPS))

    # Pad out_features to a multiple of 128 -> lane-dense (unmasked) output stores.
    w1p, o1 = _pad_rows(weight1)
    w2p, o2 = _pad_rows(weight2)

    budget = _vmem_budget_bytes()
    tm_cap = 512 if budget > 64 * 1024 * 1024 else 256
    tm_fused = b if b <= tm_cap else tm_cap
    xb = jnp.dtype(x.dtype).itemsize
    wb = jnp.dtype(weight1.dtype).itemsize

    if (not force_tiled) and _fused_fits(tm_fused, d, w1p.shape[0], w2p.shape[0],
                                         xb, wb, budget):
        old_p, new_p = _fused_scores(x, inv_x, w1p, w2p, budget, tm_fused)
    else:
        old_p = _tiled_scores(x, inv_x, w1p, budget)
        new_p = _tiled_scores(x, inv_x, w2p, budget)

    old = old_p[:, :o1]
    new = new_p[:, :o2]
    # Tiny (B, O1+O2) concat + sigma scale kept in plain XLA.
    logits = sigma.astype(jnp.float32) * jnp.concatenate([old, new], axis=1)
    return {"old_scores": old, "new_scores": new, "logits": logits}


# ---------------------------------------------------------------------------
# Params / reference / test
# ---------------------------------------------------------------------------
def init_params(key, in_features, out_features1, out_features2, dtype=jnp.float32):
    """Deterministic parameter init mirroring CosineLinear.reset_parameters."""
    k1, k2 = jax.random.split(key)
    stdv = 1.0 / math.sqrt(in_features)
    w1 = jax.random.uniform(k1, (out_features1, in_features), dtype=dtype,
                            minval=-stdv, maxval=stdv)
    w2 = jax.random.uniform(k2, (out_features2, in_features), dtype=dtype,
                            minval=-stdv, maxval=stdv)
    sigma = jnp.ones((1,), dtype=dtype)  # sigma.data.fill_(1)
    return w1, w2, sigma


def _reference(x, w1, w2, sigma):
    """Pure-JAX reference mirroring the PyTorch normalize-then-linear formulation."""
    def normalize(a):
        n = jnp.maximum(jnp.sqrt(jnp.sum(a * a, axis=1, keepdims=True)), _EPS)
        return a / n
    cos1 = normalize(x) @ normalize(w1).T
    cos2 = normalize(x) @ normalize(w2).T
    logits = sigma * jnp.concatenate([cos1, cos2], axis=1)
    return {"old_scores": cos1, "new_scores": cos2, "logits": logits}


if __name__ == "__main__":
    B, D = 8, 32          # batch, in_features
    O1, O2 = 8, 16        # out_features1, out_features2

    key = jax.random.PRNGKey(0)
    kx, kp = jax.random.split(key)
    x = jax.random.normal(kx, (B, D), dtype=jnp.float32)
    w1, w2, sigma = init_params(kp, D, O1, O2)
    ref = _reference(x, w1, w2, sigma)

    def check(out, atol, rtol, tag):
        assert out["old_scores"].shape == (B, O1), tag
        assert out["new_scores"].shape == (B, O2), tag
        assert out["logits"].shape == (B, O1 + O2), tag
        for k in ("old_scores", "new_scores", "logits"):
            assert jnp.allclose(out[k], ref[k], atol=atol, rtol=rtol), (tag, k)

    # Fused single-call path (small heads -> both padded W resident in VMEM).
    out = split_cosine_linear(x, w1, w2, sigma)
    jax.block_until_ready(out)
    # Tolerance covers TPU default (bf16-operand) MXU precision on the matmuls;
    # in full-f32 matmul mode the observed error is ~1e-6.
    check(out, 5e-3, 5e-3, "fused_f32")

    # Tiled per-head path (weights outer / batch inner, cached per-tile norms).
    out_t = split_cosine_linear(x, w1, w2, sigma, force_tiled=True)
    jax.block_until_ready(out_t)
    check(out_t, 5e-3, 5e-3, "tiled_f32")

    # bf16 weights/activations (halves weight HBM traffic; f32 norms/accum).
    out_bf16 = split_cosine_linear(
        x.astype(jnp.bfloat16), w1.astype(jnp.bfloat16), w2.astype(jnp.bfloat16),
        sigma)
    jax.block_until_ready(out_bf16)
    check(out_bf16, 2e-2, 2e-2, "fused_bf16")

    print("KERNEL_OK")
</pallas_src>

<mosaic_0001>
module attributes {stable_mosaic.version = 11 : i64} {
  func.func @_fused_kernel(%arg0: i32, %arg1: memref<8x32xf32, #tpu.memory_space<vmem>>, %arg2: memref<8x1xf32, #tpu.memory_space<vmem>>, %arg3: memref<128x32xf32, #tpu.memory_space<vmem>>, %arg4: memref<128x32xf32, #tpu.memory_space<vmem>>, %arg5: memref<8x128xf32, #tpu.memory_space<vmem>>, %arg6: memref<8x128xf32, #tpu.memory_space<vmem>>, %arg7: memref<1x128xf32, #tpu.memory_space<vmem>>, %arg8: memref<1x128xf32, #tpu.memory_space<vmem>>) attributes {dimension_semantics = [#tpu.dimension_semantics<arbitrary>], iteration_bounds = array<i64: 1>, scalar_prefetch = 0 : i64, scratch_operands = 2 : i64, tpu.core_type = #tpu.core_type<tc>, window_params = [{transform_indices = @transform_0, window_bounds = array<i64: 8, 32>}, {transform_indices = @transform_1, window_bounds = array<i64: 8, 1>}, {pipeline_mode = #tpu.pipeline_mode<synchronous>, transform_indices = @transform_2, window_bounds = array<i64: 128, 32>}, {pipeline_mode = #tpu.pipeline_mode<synchronous>, transform_indices = @transform_3, window_bounds = array<i64: 128, 32>}, {transform_indices = @transform_4, window_bounds = array<i64: 8, 128>}, {transform_indices = @transform_5, window_bounds = array<i64: 8, 128>}]} {
    %c0_i32 = arith.constant 0 : i32
    %0 = arith.cmpi eq, %arg0, %c0_i32 : i32
    %1 = arith.extui %0 : i1 to i32
    %c0_i32_0 = arith.constant 0 : i32
    %2 = arith.cmpi ne, %1, %c0_i32_0 : i32
    scf.if %2 {
      %c0_17 = arith.constant 0 : index
      %c0_18 = arith.constant 0 : index
      %21 = vector.load %arg3[%c0_17, %c0_18] : memref<128x32xf32, #tpu.memory_space<vmem>>, vector<128x32xf32>
      %22 = arith.mulf %21, %21 : vector<128x32xf32>
      %cst_19 = arith.constant 1.000000e+00 : f32
      %23 = vector.broadcast %cst_19 : f32 to vector<8x32xf32>
      %cst_20 = arith.constant dense<0.000000e+00> : vector<8x128xf32>
      %24 = tpu.matmul %23, %22, %cst_20 {dimension_numbers = #tpu.dot_dimension_numbers<[1], [1], [0], [0], [0, 0, 1, 0], [], []>} : vector<8x32xf32>, vector<128x32xf32>, vector<8x128xf32> -> vector<8x128xf32>
      %25 = vector.extract_strided_slice %24 {offsets = [0, 0], sizes = [1, 128], strides = [1, 1]} : vector<8x128xf32> to vector<1x128xf32>
      %26 = math.sqrt %25 : vector<1x128xf32>
      %cst_21 = arith.constant 9.99999996E-13 : f32
      %27 = vector.broadcast %cst_21 : f32 to vector<1x128xf32>
      %28 = arith.maximumf %26, %27 : vector<1x128xf32>
      %cst_22 = arith.constant 1.000000e+00 : f32
      %29 = vector.broadcast %cst_22 : f32 to vector<1x128xf32>
      %30 = arith.divf %29, %28 : vector<1x128xf32>
      %c0_23 = arith.constant 0 : index
      %c0_24 = arith.constant 0 : index
      %31 = vector.load %arg7[%c0_23, %c0_24] : memref<1x128xf32, #tpu.memory_space<vmem>>, vector<1x128xf32>
      tpu.vector_store %arg7[%c0_23, %c0_24], %30 {strides = array<i32>} : memref<1x128xf32, #tpu.memory_space<vmem>>, vector<1x128xf32>,
      %c0_25 = arith.constant 0 : index
      %c0_26 = arith.constant 0 : index
      %32 = vector.load %arg4[%c0_25, %c0_26] : memref<128x32xf32, #tpu.memory_space<vmem>>, vector<128x32xf32>
      %33 = arith.mulf %32, %32 : vector<128x32xf32>
      %cst_27 = arith.constant 1.000000e+00 : f32
      %34 = vector.broadcast %cst_27 : f32 to vector<8x32xf32>
      %cst_28 = arith.constant dense<0.000000e+00> : vector<8x128xf32>
      %35 = tpu.matmul %34, %33, %cst_28 {dimension_numbers = #tpu.dot_dimension_numbers<[1], [1], [0], [0], [0, 0, 1, 0], [], []>} : vector<8x32xf32>, vector<128x32xf32>, vector<8x128xf32> -> vector<8x128xf32>
      %36 = vector.extract_strided_slice %35 {offsets = [0, 0], sizes = [1, 128], strides = [1, 1]} : vector<8x128xf32> to vector<1x128xf32>
      %37 = math.sqrt %36 : vector<1x128xf32>
      %cst_29 = arith.constant 9.99999996E-13 : f32
      %38 = vector.broadcast %cst_29 : f32 to vector<1x128xf32>
      %39 = arith.maximumf %37, %38 : vector<1x128xf32>
      %cst_30 = arith.constant 1.000000e+00 : f32
      %40 = vector.broadcast %cst_30 : f32 to vector<1x128xf32>
      %41 = arith.divf %40, %39 : vector<1x128xf32>
      %c0_31 = arith.constant 0 : index
      %c0_32 = arith.constant 0 : index
      %42 = vector.load %arg8[%c0_31, %c0_32] : memref<1x128xf32, #tpu.memory_space<vmem>>, vector<1x128xf32>
      tpu.vector_store %arg8[%c0_31, %c0_32], %41 {strides = array<i32>} : memref<1x128xf32, #tpu.memory_space<vmem>>, vector<1x128xf32>,
    } else {
    }
    %c0 = arith.constant 0 : index
    %c0_1 = arith.constant 0 : index
    %3 = vector.load %arg1[%c0, %c0_1] : memref<8x32xf32, #tpu.memory_space<vmem>>, vector<8x32xf32>
    %c0_2 = arith.constant 0 : index
    %c0_3 = arith.constant 0 : index
    %4 = vector.load %arg2[%c0_2, %c0_3] : memref<8x1xf32, #tpu.memory_space<vmem>>, vector<8x1xf32>
    %c0_4 = arith.constant 0 : index
    %c0_5 = arith.constant 0 : index
    %5 = vector.load %arg3[%c0_4, %c0_5] : memref<128x32xf32, #tpu.memory_space<vmem>>, vector<128x32xf32>
    %c0_6 = arith.constant 0 : index
    %c0_7 = arith.constant 0 : index
    %6 = vector.load %arg7[%c0_6, %c0_7] : memref<1x128xf32, #tpu.memory_space<vmem>>, vector<1x128xf32>
    %cst = arith.constant dense<0.000000e+00> : vector<8x128xf32>
    %7 = tpu.matmul %3, %5, %cst {dimension_numbers = #tpu.dot_dimension_numbers<[1], [1], [0], [0], [0, 0, 1, 0], [], []>} : vector<8x32xf32>, vector<128x32xf32>, vector<8x128xf32> -> vector<8x128xf32>
    %8 = vector.broadcast %4 : vector<8x1xf32> to vector<8x128xf32>
    %9 = arith.mulf %7, %8 : vector<8x128xf32>
    %10 = vector.broadcast %6 : vector<1x128xf32> to vector<8x128xf32>
    %11 = arith.mulf %9, %10 : vector<8x128xf32>
    %c0_8 = arith.constant 0 : index
    %c0_9 = arith.constant 0 : index
    %12 = vector.load %arg5[%c0_8, %c0_9] : memref<8x128xf32, #tpu.memory_space<vmem>>, vector<8x128xf32>
    tpu.vector_store %arg5[%c0_8, %c0_9], %11 {strides = array<i32>} : memref<8x128xf32, #tpu.memory_space<vmem>>, vector<8x128xf32>,
    %c0_10 = arith.constant 0 : index
    %c0_11 = arith.constant 0 : index
    %13 = vector.load %arg4[%c0_10, %c0_11] : memref<128x32xf32, #tpu.memory_space<vmem>>, vector<128x32xf32>
    %c0_12 = arith.constant 0 : index
    %c0_13 = arith.constant 0 : index
    %14 = vector.load %arg8[%c0_12, %c0_13] : memref<1x128xf32, #tpu.memory_space<vmem>>, vector<1x128xf32>
    %cst_14 = arith.constant dense<0.000000e+00> : vector<8x128xf32>
    %15 = tpu.matmul %3, %13, %cst_14 {dimension_numbers = #tpu.dot_dimension_numbers<[1], [1], [0], [0], [0, 0, 1, 0], [], []>} : vector<8x32xf32>, vector<128x32xf32>, vector<8x128xf32> -> vector<8x128xf32>
    %16 = vector.broadcast %4 : vector<8x1xf32> to vector<8x128xf32>
    %17 = arith.mulf %15, %16 : vector<8x128xf32>
    %18 = vector.broadcast %14 : vector<1x128xf32> to vector<8x128xf32>
    %19 = arith.mulf %17, %18 : vector<8x128xf32>
    %c0_15 = arith.constant 0 : index
    %c0_16 = arith.constant 0 : index
    %20 = vector.load %arg6[%c0_15, %c0_16] : memref<8x128xf32, #tpu.memory_space<vmem>>, vector<8x128xf32>
    tpu.vector_store %arg6[%c0_15, %c0_16], %19 {strides = array<i32>} : memref<8x128xf32, #tpu.memory_space<vmem>>, vector<8x128xf32>,
    return
  }
  func.func @transform_0(%arg0: i32) -> (i32, i32) {
    %c0_i32 = arith.constant 0 : i32
    %c0_i32_0 = arith.constant 0 : i32
    return %arg0, %c0_i32 : i32, i32
  }
  func.func @transform_1(%arg0: i32) -> (i32, i32) {
    %c0_i32 = arith.constant 0 : i32
    %c0_i32_0 = arith.constant 0 : i32
    return %arg0, %c0_i32 : i32, i32
  }
  func.func @transform_2(%arg0: i32) -> (i32, i32) {
    %c0_i32 = arith.constant 0 : i32
    %c0_i32_0 = arith.constant 0 : i32
    %c0_i32_1 = arith.constant 0 : i32
    return %c0_i32, %c0_i32_0 : i32, i32
  }
  func.func @transform_3(%arg0: i32) -> (i32, i32) {
    %c0_i32 = arith.constant 0 : i32
    %c0_i32_0 = arith.constant 0 : i32
    %c0_i32_1 = arith.constant 0 : i32
    return %c0_i32, %c0_i32_0 : i32, i32
  }
  func.func @transform_4(%arg0: i32) -> (i32, i32) {
    %c0_i32 = arith.constant 0 : i32
    %c0_i32_0 = arith.constant 0 : i32
    return %arg0, %c0_i32 : i32, i32
  }
  func.func @transform_5(%arg0: i32) -> (i32, i32) {
    %c0_i32 = arith.constant 0 : i32
    %c0_i32_0 = arith.constant 0 : i32
    return %arg0, %c0_i32 : i32, i32
  }
}

</mosaic_0001>

<bundles_post_ra>
// kernel: split_cosine_linear.1
= control target key start
LH: loop header
LB: loop body
LE: loop exit
PB: predicated region body
PF: predicated region fallthrough
CT: control target
= control target key end

     0   :  { %v947_v0 = vmov 0.0   ;;  %vm55_vm0 = vcmask 261120   ;;  %vm948_vm1 = vmmov 0   ;;  %v949_v11 = vmov 0   ;;  %s1389_s2 = inlined_call_operand.vmem [shape: f32[128,32], index: 2, kind: input, shape index: {}]   ;;  %s1390_s3 = inlined_call_operand.vmem [shape: f32[128,32], index: 3, kind: input, shape index: {}]   ;;  %s1391_s1 = inlined_call_operand.vmem [shape: f32[8,1], index: 1, kind: input, shape index: {}]   ;;  %s1392_s0 = inlined_call_operand.vmem [shape: f32[8,32], index: 0, kind: input, shape index: {}]   ;;  %s1393_s4 = inlined_call_operand.vmem [shape: f32[8,128], index: 4, kind: output, shape index: {0}]   ;;  %s1394_s5 = inlined_call_operand.vmem [shape: f32[8,128], index: 5, kind: output, shape index: {1}]  }
   0x1   :  { %794 = vmatprep.subr.mxu0 %v947_v0  ;;  %829 = vmatprep.subr.mxu1 %v947_v0  ;;  %v986_v1 = vld [vmem:[%s1389_s2 + $0x78] sm:$0xff]  ;;  %v996_v3 = vld [vmem:[%s1389_s2 + $0x70] sm:$0xff]  ;;  %v1022_v9 = vld [vmem:[%s1389_s2 + $0x68] sm:$0xff] }
   0x2   :  { %v991_v2 = vld [vmem:[%s1390_s3 + $0x78] sm:$0xff]  ;;  %v54_v4 = vmul.f32 %v986_v1, %v986_v1  ;;  %v1005_v6 = vld [vmem:[%s1390_s3 + $0x70] sm:$0xff]  ;;  %826 = vmatprep.mubr.msk.f32.mxu0 %vm948_vm1, %v947_v0  ;;  %861 = vmatprep.mubr.msk.f32.mxu1 %vm948_vm1, %v947_v0  ;;  %v53_v7 = vmul.f32 %v996_v3, %v996_v3  ;;  %v1027_v10 = vld [vmem:[%s1390_s3 + $0x68] sm:$0xff]  ;;  %v52_v12 = vmul.f32 %v1022_v9, %v1022_v9 }
   0x3   :  { %v219_v5 = vmul.f32 %v991_v2, %v991_v2  ;;  %v218_v8 = vmul.f32 %v1005_v6, %v1005_v6  ;;  %938 = vset.pattern.permute.xlu0 %v949_v11  ;;  %v217_v13 = vmul.f32 %v1027_v10, %v1027_v10  ;;  %v1040_v14 = vld [vmem:[%s1389_s2 + $0x60] sm:$0xff]  ;;  %v1061_v19 = vld [vmem:[%s1389_s2 + $0x58] sm:$0xff]  ;;  %v1079_v23 = vld [vmem:[%s1389_s2 + $0x50] sm:$0xff] }
   0x4   :  { %795 = vmatpush3.xpose.msk.msra.mxu0 %vm55_vm0, %v54_v4  ;;  %v1045_v15 = vld [vmem:[%s1390_s3 + $0x60] sm:$0xff]  ;;  %v51_v16 = vmul.f32 %v1040_v14, %v1040_v14  ;;  %v1066_v20 = vld [vmem:[%s1390_s3 + $0x58] sm:$0xff]  ;;  %v50_v21 = vmul.f32 %v1061_v19, %v1061_v19  ;;  %v1084_v24 = vld [vmem:[%s1390_s3 + $0x50] sm:$0xff]  ;;  %v49_v25 = vmul.f32 %v1079_v23, %v1079_v23 }
   0x5   :  { %830 = vmatpush3.xpose.msk.msra.mxu1 %vm55_vm0, %v219_v5  ;;  %796 = vmatprep.subr.mxu0 %v947_v0  ;;  %v216_v17 = vmul.f32 %v1045_v15, %v1045_v15  ;;  %v350_v18 = vld [vmem:[%s1391_s1] sm:$0xff]  ;;  %v215_v22 = vmul.f32 %v1066_v20, %v1066_v20  ;;  %v214_v26 = vmul.f32 %v1084_v24, %v1084_v24  ;;  %v1097_v27 = vld [vmem:[%s1389_s2 + $0x48] sm:$0xff]  ;;  %v1133_v35 = vld [vmem:[%s1389_s2 + $0x38] sm:$0xff] }
   0x6   :  { %831 = vmatprep.subr.mxu1 %v947_v0  ;;  %492 = vperm.xlu0 %938, %v350_v18   ;;  %v1102_v28 = vld [vmem:[%s1390_s3 + $0x48] sm:$0xff]  ;;  %v48_v29 = vmul.f32 %v1097_v27, %v1097_v27  ;;  %v1115_v31 = vld [vmem:[%s1389_s2 + $0x40] sm:$0xff]  ;;  %v1138_v36 = vld [vmem:[%s1390_s3 + $0x38] sm:$0xff]  ;;  %v46_v37 = vmul.f32 %v1133_v35, %v1133_v35 }
   0x7   :  { %v213_v30 = vmul.f32 %v1102_v28, %v1102_v28  ;;  %v1120_v32 = vld [vmem:[%s1390_s3 + $0x40] sm:$0xff]  ;;  %v47_v33 = vmul.f32 %v1115_v31, %v1115_v31  ;;  %v211_v38 = vmul.f32 %v1138_v36, %v1138_v36  ;;  %v1151_v39 = vld [vmem:[%s1389_s2 + $0x30] sm:$0xff]  ;;  %v1169_v43 = vld [vmem:[%s1389_s2 + $0x28] sm:$0xff] }
   0x8   :  { %797 = vmatpush3.xpose.msk.msra.mxu0 %vm55_vm0, %v53_v7  ;;  %v212_v34 = vmul.f32 %v1120_v32, %v1120_v32  ;;  %v1156_v40 = vld [vmem:[%s1390_s3 + $0x30] sm:$0xff]  ;;  %v45_v41 = vmul.f32 %v1151_v39, %v1151_v39  ;;  %v1174_v44 = vld [vmem:[%s1390_s3 + $0x28] sm:$0xff]  ;;  %v44_v45 = vmul.f32 %v1169_v43, %v1169_v43  ;;  %v1187_v47 = vld [vmem:[%s1389_s2 + $0x20] sm:$0xff] }
   0x9   :  { %832 = vmatpush3.xpose.msk.msra.mxu1 %vm55_vm0, %v218_v8  ;;  %798 = vmatprep.subr.mxu0 %v947_v0  ;;  %v210_v42 = vmul.f32 %v1156_v40, %v1156_v40  ;;  %v209_v46 = vmul.f32 %v1174_v44, %v1174_v44  ;;  %v1192_v48 = vld [vmem:[%s1390_s3 + $0x20] sm:$0xff]  ;;  %v43_v49 = vmul.f32 %v1187_v47, %v1187_v47  ;;  %v1205_v51 = vld [vmem:[%s1389_s2 + $0x18] sm:$0xff]  ;;  %v1223_v55 = vld [vmem:[%s1389_s2 + $0x10] sm:$0xff]  ;;  %v950_v8 = vmov 1.0  }
   0xa   :  { %833 = vmatprep.subr.mxu1 %v947_v0  ;;  %v208_v50 = vmul.f32 %v1192_v48, %v1192_v48  ;;  %v1210_v52 = vld [vmem:[%s1390_s3 + $0x18] sm:$0xff]  ;;  %v42_v53 = vmul.f32 %v1205_v51, %v1205_v51  ;;  %v1228_v56 = vld [vmem:[%s1390_s3 + $0x10] sm:$0xff]  ;;  %v41_v57 = vmul.f32 %v1223_v55, %v1223_v55  ;;  %v1241_v59 = vld [vmem:[%s1389_s2 + $0x8] sm:$0xff] }
   0xb   :  { %v207_v54 = vmul.f32 %v1210_v52, %v1210_v52  ;;  %v206_v58 = vmul.f32 %v1228_v56, %v1228_v56  ;;  %v1246_v60 = vld [vmem:[%s1390_s3 + $0x8] sm:$0xff]  ;;  %v40_v61 = vmul.f32 %v1241_v59, %v1241_v59  ;;  %v1259_v63 = vld [vmem:[%s1389_s2] sm:$0xff] }
   0xc   :  { %799 = vmatpush3.xpose.msk.msra.mxu0 %vm55_vm0, %v52_v12  ;;  %v205_v62 = vmul.f32 %v1246_v60, %v1246_v60  ;;  %v1264_v4 = vld [vmem:[%s1390_s3] sm:$0xff]  ;;  %v39_v5 = vmul.f32 %v1259_v63, %v1259_v63 }
   0xd   :  { %834 = vmatpush3.xpose.msk.msra.mxu1 %vm55_vm0, %v217_v13  ;;  %800 = vmatprep.subr.mxu0 %v947_v0  ;;  %v204_v7 = vmul.f32 %v1264_v4, %v1264_v4 }
   0xe   :  { %835 = vmatprep.subr.mxu1 %v947_v0 }
  0x10   :  { %801 = vmatpush3.xpose.msk.msra.mxu0 %vm55_vm0, %v51_v16 }
  0x11   :  { %836 = vmatpush3.xpose.msk.msra.mxu1 %vm55_vm0, %v216_v17  ;;  %802 = vmatprep.subr.mxu0 %v947_v0 }
  0x12   :  { %837 = vmatprep.subr.mxu1 %v947_v0 }
  0x14   :  { %803 = vmatpush3.xpose.msk.msra.mxu0 %vm55_vm0, %v50_v21 }
  0x15   :  { %838 = vmatpush3.xpose.msk.msra.mxu1 %vm55_vm0, %v215_v22  ;;  %804 = vmatprep.subr.mxu0 %v947_v0 }
  0x16   :  { %839 = vmatprep.subr.mxu1 %v947_v0 }
  0x18   :  { %805 = vmatpush3.xpose.msk.msra.mxu0 %vm55_vm0, %v49_v25 }
  0x19   :  { %840 = vmatpush3.xpose.msk.msra.mxu1 %vm55_vm0, %v214_v26  ;;  %806 = vmatprep.subr.mxu0 %v947_v0 }
  0x1a   :  { %841 = vmatprep.subr.mxu1 %v947_v0 }
  0x1c   :  { %807 = vmatpush3.xpose.msk.msra.mxu0 %vm55_vm0, %v48_v29 }
  0x1d   :  { %842 = vmatpush3.xpose.msk.msra.mxu1 %vm55_vm0, %v213_v30  ;;  %808 = vmatprep.subr.mxu0 %v947_v0 }
  0x1e   :  { %843 = vmatprep.subr.mxu1 %v947_v0 }
  0x20   :  { %809 = vmatpush3.xpose.msk.msra.mxu0 %vm55_vm0, %v47_v33 }
  0x21   :  { %844 = vmatpush3.xpose.msk.msra.mxu1 %vm55_vm0, %v212_v34  ;;  %810 = vmatprep.subr.mxu0 %v947_v0 }
  0x22   :  { %845 = vmatprep.subr.mxu1 %v947_v0 }
  0x24   :  { %811 = vmatpush3.xpose.msk.msra.mxu0 %vm55_vm0, %v46_v37 }
  0x25   :  { %846 = vmatpush3.xpose.msk.msra.mxu1 %vm55_vm0, %v211_v38  ;;  %812 = vmatprep.subr.mxu0 %v947_v0 }
  0x26   :  { %847 = vmatprep.subr.mxu1 %v947_v0 }
  0x28   :  { %813 = vmatpush3.xpose.msk.msra.mxu0 %vm55_vm0, %v45_v41 }
  0x29   :  { %848 = vmatpush3.xpose.msk.msra.mxu1 %vm55_vm0, %v210_v42  ;;  %814 = vmatprep.subr.mxu0 %v947_v0 }
  0x2a   :  { %849 = vmatprep.subr.mxu1 %v947_v0 }
  0x2c   :  { %815 = vmatpush3.xpose.msk.msra.mxu0 %vm55_vm0, %v44_v45 }
  0x2d   :  { %850 = vmatpush3.xpose.msk.msra.mxu1 %vm55_vm0, %v209_v46  ;;  %816 = vmatprep.subr.mxu0 %v947_v0 }
  0x2e   :  { %851 = vmatprep.subr.mxu1 %v947_v0 }
  0x30   :  { %817 = vmatpush3.xpose.msk.msra.mxu0 %vm55_vm0, %v43_v49 }
  0x31   :  { %852 = vmatpush3.xpose.msk.msra.mxu1 %vm55_vm0, %v208_v50  ;;  %818 = vmatprep.subr.mxu0 %v947_v0 }
  0x32   :  { %853 = vmatprep.subr.mxu1 %v947_v0 }
  0x34   :  { %819 = vmatpush3.xpose.msk.msra.mxu0 %vm55_vm0, %v42_v53 }
  0x35   :  { %854 = vmatpush3.xpose.msk.msra.mxu1 %vm55_vm0, %v207_v54  ;;  %820 = vmatprep.subr.mxu0 %v947_v0 }
  0x36   :  { %855 = vmatprep.subr.mxu1 %v947_v0 }
  0x38   :  { %821 = vmatpush3.xpose.msk.msra.mxu0 %vm55_vm0, %v41_v57 }
  0x39   :  { %856 = vmatpush3.xpose.msk.msra.mxu1 %vm55_vm0, %v206_v58  ;;  %822 = vmatprep.subr.mxu0 %v947_v0 }
  0x3a   :  { %857 = vmatprep.subr.mxu1 %v947_v0 }
  0x3c   :  { %823 = vmatpush3.xpose.msk.msra.mxu0 %vm55_vm0, %v40_v61 }
  0x3d   :  { %858 = vmatpush3.xpose.msk.msra.mxu1 %vm55_vm0, %v205_v62  ;;  %824 = vmatprep.subr.mxu0 %v947_v0 }
  0x3e   :  { %859 = vmatprep.subr.mxu1 %v947_v0 }
  0x40   :  { %825 = vmatpush3.xpose.msk.msra.mxu0 %vm55_vm0, %v39_v5 }
  0x41   :  { %860 = vmatpush3.xpose.msk.msra.mxu1 %vm55_vm0, %v204_v7  ;;  %864 = vmatprep.subr.mxu0 %v947_v0 }
  0x42   :  { %899 = vmatprep.subr.mxu1 %v947_v0 }
  0x43   :  { %827 = vmatmul.mubr.msk.f32.vlgmr.msra.gmra.mxu0 %vm55_vm0, %v950_v8 }
  0x44   :  { %862 = vmatmul.mubr.msk.f32.vlgmr.msra.gmra.mxu1 %vm55_vm0, %v950_v8  ;;  %865 = vmatpush3.xpose.msk.msra.mxu0 %vm55_vm0, %v986_v1  ;;  %v349_v1 = vld [vmem:[%s1392_s0] sm:$0xff] }
  0x45   :  { %900 = vmatpush3.xpose.msk.msra.mxu1 %vm55_vm0, %v991_v2  ;;  %866 = vmatprep.subr.mxu0 %v947_v0 }
  0x46   :  { %901 = vmatprep.subr.mxu1 %v947_v0  ;;  %896 = vmatprep.mubr.msk.f32.mxu0 %vm948_vm1, %v947_v0 }
  0x47   :  { %931 = vmatprep.mubr.msk.f32.mxu1 %vm948_vm1, %v947_v0 }
  0x48   :  { %867 = vmatpush3.xpose.msk.msra.mxu0 %vm55_vm0, %v996_v3 }
  0x49   :  { %902 = vmatpush3.xpose.msk.msra.mxu1 %vm55_vm0, %v1005_v6  ;;  %868 = vmatprep.subr.mxu0 %v947_v0 }
  0x4a   :  { %903 = vmatprep.subr.mxu1 %v947_v0 }
  0x4c   :  { %869 = vmatpush3.xpose.msk.msra.mxu0 %vm55_vm0, %v1022_v9 }
  0x4d   :  { %904 = vmatpush3.xpose.msk.msra.mxu1 %vm55_vm0, %v1027_v10  ;;  %870 = vmatprep.subr.mxu0 %v947_v0 }
  0x4e   :  { %905 = vmatprep.subr.mxu1 %v947_v0 }
  0x50   :  { %871 = vmatpush3.xpose.msk.msra.mxu0 %vm55_vm0, %v1040_v14 }
  0x51   :  { %906 = vmatpush3.xpose.msk.msra.mxu1 %vm55_vm0, %v1045_v15  ;;  %872 = vmatprep.subr.mxu0 %v947_v0 }
  0x52   :  { %907 = vmatprep.subr.mxu1 %v947_v0 }
  0x54   :  { %873 = vmatpush3.xpose.msk.msra.mxu0 %vm55_vm0, %v1061_v19 }
  0x55   :  { %908 = vmatpush3.xpose.msk.msra.mxu1 %vm55_vm0, %v1066_v20  ;;  %874 = vmatprep.subr.mxu0 %v947_v0 }
  0x56   :  { %909 = vmatprep.subr.mxu1 %v947_v0 }
  0x58   :  { %875 = vmatpush3.xpose.msk.msra.mxu0 %vm55_vm0, %v1079_v23 }
  0x59   :  { %910 = vmatpush3.xpose.msk.msra.mxu1 %vm55_vm0, %v1084_v24  ;;  %876 = vmatprep.subr.mxu0 %v947_v0 }
  0x5a   :  { %911 = vmatprep.subr.mxu1 %v947_v0 }
  0x5c   :  { %877 = vmatpush3.xpose.msk.msra.mxu0 %vm55_vm0, %v1097_v27 }
  0x5d   :  { %912 = vmatpush3.xpose.msk.msra.mxu1 %vm55_vm0, %v1102_v28  ;;  %878 = vmatprep.subr.mxu0 %v947_v0 }
  0x5e   :  { %913 = vmatprep.subr.mxu1 %v947_v0 }
  0x60   :  { %879 = vmatpush3.xpose.msk.msra.mxu0 %vm55_vm0, %v1115_v31 }
  0x61   :  { %914 = vmatpush3.xpose.msk.msra.mxu1 %vm55_vm0, %v1120_v32  ;;  %880 = vmatprep.subr.mxu0 %v947_v0 }
  0x62   :  { %915 = vmatprep.subr.mxu1 %v947_v0 }
  0x64   :  { %881 = vmatpush3.xpose.msk.msra.mxu0 %vm55_vm0, %v1133_v35 }
  0x65   :  { %916 = vmatpush3.xpose.msk.msra.mxu1 %vm55_vm0, %v1138_v36  ;;  %882 = vmatprep.subr.mxu0 %v947_v0 }
  0x66   :  { %917 = vmatprep.subr.mxu1 %v947_v0 }
  0x68   :  { %883 = vmatpush3.xpose.msk.msra.mxu0 %vm55_vm0, %v1151_v39 }
  0x69   :  { %918 = vmatpush3.xpose.msk.msra.mxu1 %vm55_vm0, %v1156_v40  ;;  %884 = vmatprep.subr.mxu0 %v947_v0 }
  0x6a   :  { %919 = vmatprep.subr.mxu1 %v947_v0 }
  0x6c   :  { %885 = vmatpush3.xpose.msk.msra.mxu0 %vm55_vm0, %v1169_v43 }
  0x6d   :  { %920 = vmatpush3.xpose.msk.msra.mxu1 %vm55_vm0, %v1174_v44  ;;  %886 = vmatprep.subr.mxu0 %v947_v0 }
  0x6e   :  { %921 = vmatprep.subr.mxu1 %v947_v0 }
  0x70   :  { %887 = vmatpush3.xpose.msk.msra.mxu0 %vm55_vm0, %v1187_v47 }
  0x71   :  { %922 = vmatpush3.xpose.msk.msra.mxu1 %vm55_vm0, %v1192_v48  ;;  %888 = vmatprep.subr.mxu0 %v947_v0 }
  0x72   :  { %923 = vmatprep.subr.mxu1 %v947_v0 }
  0x74   :  { %889 = vmatpush3.xpose.msk.msra.mxu0 %vm55_vm0, %v1205_v51 }
  0x75   :  { %924 = vmatpush3.xpose.msk.msra.mxu1 %vm55_vm0, %v1210_v52  ;;  %890 = vmatprep.subr.mxu0 %v947_v0 }
  0x76   :  { %925 = vmatprep.subr.mxu1 %v947_v0 }
  0x78   :  { %891 = vmatpush3.xpose.msk.msra.mxu0 %vm55_vm0, %v1223_v55 }
  0x79   :  { %926 = vmatpush3.xpose.msk.msra.mxu1 %vm55_vm0, %v1228_v56  ;;  %892 = vmatprep.subr.mxu0 %v947_v0 }
  0x7a   :  { %927 = vmatprep.subr.mxu1 %v947_v0 }
  0x7c   :  { %893 = vmatpush3.xpose.msk.msra.mxu0 %vm55_vm0, %v1241_v59 }
  0x7d   :  { %928 = vmatpush3.xpose.msk.msra.mxu1 %vm55_vm0, %v1246_v60  ;;  %894 = vmatprep.subr.mxu0 %v947_v0 }
  0x7e   :  { %929 = vmatprep.subr.mxu1 %v947_v0 }
  0x80   :  { %895 = vmatpush3.xpose.msk.msra.mxu0 %vm55_vm0, %v1259_v63 }
  0x81   :  { %930 = vmatpush3.xpose.msk.msra.mxu1 %vm55_vm0, %v1264_v4  ;;  %v493_v23 = vpop.permute.xlu0 %492 }
  0x83   :  { %897 = vmatmul.mubr.msk.f32.vlgmr.msra.gmra.mxu0 %vm55_vm0, %v349_v1 }
  0x84   :  { %932 = vmatmul.mubr.msk.f32.vlgmr.msra.gmra.mxu1 %vm55_vm0, %v349_v1 }
 0x103   :  { %v173_v2 = vpop.f32.mrf.mxu0 }
 0x104   :  { %v334_v3 = vpop.f32.mrf.mxu1  ;;  %939 = vrsqrt.f32 %v173_v2  ;;  %vm179_vm2 = vcmp.eq.f32.partialorder %v173_v2, inf  ;;  %v182_v12 = vand.u32 2147483648, %v173_v2  ;;  %vm181_vm3 = vcmp.eq.f32.partialorder %v173_v2, 0.0 }
 0x105   :  { %941 = vrsqrt.f32 %v334_v3  ;;  %v828_v6 = vpop.f32.mrf.mxu0  ;;  %vm340_vm4 = vcmp.eq.f32.partialorder %v334_v3, inf  ;;  %v343_v15 = vand.u32 2147483648, %v334_v3  ;;  %vm342_vm5 = vcmp.eq.f32.partialorder %v334_v3, 0.0 }
 0x106   :  { %v863_v0 = vpop.f32.mrf.mxu1 }
 0x111   :  { %v940_v9 = vpop.eup %939 }
 0x112   :  { %v942_v10 = vpop.eup %941  ;;  %v178_v11 = vmul.f32 %v940_v9, %v173_v2 }
 0x113   :  { %v339_v13 = vmul.f32 %v942_v10, %v334_v3 }
 0x114   :  { %v180_v14 = vsel %vm179_vm2, %v173_v2, %v178_v11 }
 0x115   :  { %v183_v16 = vsel %vm181_vm3, %v182_v12, %v180_v14  ;;  %v341_v17 = vsel %vm340_vm4, %v334_v3, %v339_v13 }
 0x116   :  { %v184_v18 = vmax.f32 %v183_v16, 1e-12  ;;  %v344_v19 = vsel %vm342_vm5, %v343_v15, %v341_v17 }
 0x117   :  { %v345_v20 = vmax.f32 %v344_v19, 1e-12 }
 0x118   :  { %943 = vrcp.f32 %v184_v18 }
 0x119   :  { %945 = vrcp.f32 %v345_v20 }
 0x125   :  { %v944_v21 = vpop.eup %943 }
 0x126   :  { %v946_v22 = vpop.eup %945  ;;  %187 = vst [vmem:[#allocation2] sm:$0x1] %v944_v21 }
 0x127   :  { %348 = vst [vmem:[#allocation3] sm:$0x1] %v946_v22 }
 0x12d   :  { %v707_v28 = vld [vmem:[#allocation2] ss:$0 sm:$0xff] }
 0x12e   :  { %v725_v29 = vld [vmem:[#allocation3] ss:$0 sm:$0xff] }
 0x143   :  { %v486_v24 = vpop.f32.mrf.mxu0 }
 0x144   :  { %v635_v25 = vpop.f32.mrf.mxu1  ;;  %v495_v26 = vmul.f32 %v493_v23, %v486_v24 }
 0x145   :  { %v639_v27 = vmul.f32 %v635_v25, %v493_v23  ;;  %v898_v30 = vpop.f32.mrf.mxu0 }
 0x146   :  { %v933_v31 = vpop.f32.mrf.mxu1  ;;  %v502_v32 = vmul.f32 %v707_v28, %v495_v26 }
 0x147   :  { %v646_v33 = vmul.f32 %v725_v29, %v639_v27 }
 0x148   :  { %503 = vst [vmem:[%s1393_s4] sm:$0xff] %v502_v32 }
 0x149   :  { %647 = vst [vmem:[%s1394_s5] sm:$0xff] %v646_v33 }

</bundles_post_ra>
